<compile_context>
chip_gen: v7x
topology: tpu7x:2x2x1
jax: 0.10.0
libtpu: 0.0.40
codegen_flags: <defaults>
</compile_context>

<pallas_src>
import jax
import jax.numpy as jnp
from jax.experimental import pallas as pl
from jax.experimental.pallas import tpu as pltpu

_NOUT = 128  # lane-dense output width; heads live in lanes 0..2


def _round_up(x, m):
    return (x + m - 1) // m * m


def propnet3_kernel(h_ref, w1_ref, b1_ref, w2_ref, b2_ref, w3_ref, b3_ref, out_ref):
    """Fused evaluation of 3 PropNet MLP heads on the same latent h.

    h_ref : (TB, L)          bf16
    w1_ref: (L, 3*H1)        bf16   (heads concatenated along out dim)
    b1_ref: (1, 3*H1)        f32
    w2_ref: (3*H1, 3*H2)     bf16   (block-diagonal over heads)
    b2_ref: (1, 3*H2)        f32
    w3_ref: (3*H2, 128)      f32    (head h's weights in column h; other cols 0)
    b3_ref: (1, 128)         f32    (head biases in lanes 0..2)
    out_ref: (TB, 128)       f32    (lanes 0..2 = ds, sa, td)
    """
    # Layer 1: single head-fused bf16 MXU matmul, f32 accumulation.
    a1 = jnp.tanh(
        jnp.dot(h_ref[...], w1_ref[...], preferred_element_type=jnp.float32)
        + b1_ref[...]
    )
    # Layer 2: block-diagonal fused weight keeps heads independent; bf16 MXU
    # operands, f32 accumulation / bias / tanh.
    a2 = jnp.tanh(
        jnp.dot(a1.astype(jnp.bfloat16), w2_ref[...],
                preferred_element_type=jnp.float32)
        + b2_ref[...]
    )
    # Layer 3: tiny matmul onto the otherwise-idle MXU; lane-dense (TB, 128)
    # output gives full-lane (unmasked) stores.
    out_ref[...] = (
        jnp.dot(a2, w3_ref[...], preferred_element_type=jnp.float32) + b3_ref[...]
    )


def run_propnets(h, packed_params):
    """h: (B, L) bf16 (or castable). packed_params: output of pack_propnet_params."""
    B, L = h.shape
    w1p, b1p, w2p, b2p, w3p, b3p = packed_params
    H1x3 = w1p.shape[1]
    H2x3 = w2p.shape[1]

    if h.dtype != jnp.bfloat16:
        h = h.astype(jnp.bfloat16)

    # Pad only to the 8-row sublane multiple (cheap); the grid handles a
    # partial last tile via pl.cdiv, so no full-TB jnp.pad pass over h.
    B_pad = _round_up(B, 8)
    if B_pad != B:
        h = jnp.pad(h, ((0, B_pad - B), (0, 0)))
    TB = min(1024, B_pad)
    grid = (pl.cdiv(B_pad, TB),)

    out = pl.pallas_call(
        propnet3_kernel,
        out_shape=jax.ShapeDtypeStruct((B_pad, _NOUT), jnp.float32),
        grid_spec=pltpu.PrefetchScalarGridSpec(
            num_scalar_prefetch=0,
            grid=grid,
            in_specs=[
                pl.BlockSpec((TB, L), lambda i: (i, 0)),        # h: streamed over B
                pl.BlockSpec((L, H1x3), lambda i: (0, 0)),      # weights: resident
                pl.BlockSpec((1, H1x3), lambda i: (0, 0)),
                pl.BlockSpec((H1x3, H2x3), lambda i: (0, 0)),
                pl.BlockSpec((1, H2x3), lambda i: (0, 0)),
                pl.BlockSpec((H2x3, _NOUT), lambda i: (0, 0)),
                pl.BlockSpec((1, _NOUT), lambda i: (0, 0)),
            ],
            out_specs=pl.BlockSpec((TB, _NOUT), lambda i: (i, 0)),
        ),
        compiler_params=pltpu.CompilerParams(
            dimension_semantics=("parallel",),
        ),
    )(h, w1p, b1p, w2p, b2p, w3p, b3p)

    out = out[:B, :3]
    return out[:, 0:1], out[:, 1:2], out[:, 2:3]  # (out_ds, out_sa, out_td)


def to_latent_format(x, adj, dtype=jnp.bfloat16):
    """Deterministic stand-in for MolHF.encode + to_latent_format.

    # TODO(synk): MolHF flow (encode / to_latent_format) has no definition in
    # the provided source; replaced by flatten+concat of node/edge tensors.
    """
    B = x.shape[0]
    z_node = x.reshape(B, -1)
    z_edge = adj.reshape(B, -1)
    return jnp.concatenate([z_node, z_edge], axis=-1).astype(dtype)


def init_propnet_params(key, latent_size, hidden_size):
    """PyTorch nn.Linear default init: U(-1/sqrt(fan_in), 1/sqrt(fan_in)).
    Returns per-head-stacked params for 3 heads (ds, sa, td)."""
    vh = (latent_size,) + tuple(hidden_size) + (1,)
    n_layers = len(vh) - 1
    keys = jax.random.split(key, 3 * n_layers * 2).reshape(3, n_layers, 2, -1)
    ws, bs = [], []
    for layer in range(n_layers):
        fan_in, fan_out = vh[layer], vh[layer + 1]
        bound = 1.0 / jnp.sqrt(jnp.float32(fan_in))
        w_heads, b_heads = [], []
        for head in range(3):
            kw, kb = keys[head, layer, 0], keys[head, layer, 1]
            w_heads.append(
                jax.random.uniform(kw, (fan_in, fan_out), jnp.float32, -bound, bound)
            )
            b_heads.append(
                jax.random.uniform(kb, (1, fan_out), jnp.float32, -bound, bound)
            )
        ws.append(jnp.stack(w_heads))   # (3, fan_in, fan_out)
        bs.append(jnp.stack(b_heads))   # (3, 1, fan_out)
    # (w1s, b1s, w2s, b2s, w3s, b3s)
    return ws[0], bs[0], ws[1], bs[1], ws[2], bs[2]


def pack_propnet_params(params):
    """Pack per-head params into the head-fused layout used by the kernel."""
    w1s, b1s, w2s, b2s, w3s, b3s = params
    H1 = w1s.shape[2]
    H2 = w2s.shape[2]

    # Layer 1: concat heads along the output dim.  bf16 MXU operand.
    w1p = jnp.concatenate([w1s[h] for h in range(3)], axis=1).astype(jnp.bfloat16)
    b1p = jnp.concatenate([b1s[h] for h in range(3)], axis=1)          # (1, 3*H1)

    # Layer 2: block-diagonal so heads stay independent after fusion; bf16.
    w2p = jnp.zeros((3 * H1, 3 * H2), jnp.float32)
    for h in range(3):
        w2p = w2p.at[h * H1:(h + 1) * H1, h * H2:(h + 1) * H2].set(w2s[h])
    w2p = w2p.astype(jnp.bfloat16)
    b2p = jnp.concatenate([b2s[h] for h in range(3)], axis=1)          # (1, 3*H2)

    # Layer 3: (3*H2, 128) with head h's weights in column h -> lane-dense MXU
    # matmul; biases in lanes 0..2 of a (1, 128) row.
    w3p = jnp.zeros((3 * H2, _NOUT), jnp.float32)
    for h in range(3):
        w3p = w3p.at[h * H2:(h + 1) * H2, h].set(w3s[h][:, 0])
    b3_vec = jnp.stack([b3s[h][0, 0] for h in range(3)])
    b3p = jnp.zeros((1, _NOUT), jnp.float32).at[0, :3].set(b3_vec)

    return (w1p, b1p, w2p, b2p, w3p, b3p)


def optim_model_forward(x, adj, packed_params):
    h = to_latent_format(x, adj)              # glue (plain JAX), bf16 latent
    return run_propnets(h, packed_params)     # hot path (Pallas kernel)


def reference_forward(x, adj, params):
    """Pure-JAX reference on the UNPACKED per-head params (validates both the
    fusion/packing and the kernel).  Mirrors the kernel's bf16 rounding of the
    layer-1 and layer-2 MXU operands; accumulation stays f32."""
    h = to_latent_format(x, adj, dtype=jnp.float32)
    w1s, b1s, w2s, b2s, w3s, b3s = params
    h_q = h.astype(jnp.bfloat16).astype(jnp.float32)
    outs = []
    for head in range(3):
        w1_q = w1s[head].astype(jnp.bfloat16).astype(jnp.float32)
        w2_q = w2s[head].astype(jnp.bfloat16).astype(jnp.float32)
        a1 = jnp.tanh(h_q @ w1_q + b1s[head])
        a1_q = a1.astype(jnp.bfloat16).astype(jnp.float32)
        a2 = jnp.tanh(a1_q @ w2_q + b2s[head])
        outs.append(a2 @ w3s[head] + b3s[head])
    return tuple(outs)


if __name__ == "__main__":
    key = jax.random.PRNGKey(0)
    k_x, k_adj, k_p = jax.random.split(key, 3)

    # Small synthetic molecule-like inputs:
    #   x  : (B, n_nodes, n_node_feat) = (2, 16, 8)     -> latent_node_length = 128
    #   adj: (B, n_bond_types, n, n)   = (2, 4, 16, 16) -> latent_edge_length = 1024
    # latent_size = 128 + 1024 = 1152; hidden_size = [128, 32]
    B, N, F, E = 2, 16, 8, 4
    x = jax.random.normal(k_x, (B, N, F), jnp.float32)
    adj = jax.random.normal(k_adj, (B, E, N, N), jnp.float32)

    latent_size = N * F + E * N * N
    hidden_size = [128, 32]
    raw_params = init_propnet_params(k_p, latent_size, hidden_size)
    packed_params = pack_propnet_params(raw_params)

    out_ds, out_sa, out_td = optim_model_forward(x, adj, packed_params)
    jax.block_until_ready((out_ds, out_sa, out_td))

    ref_ds, ref_sa, ref_td = reference_forward(x, adj, raw_params)
    assert out_ds.shape == (B, 1) and out_sa.shape == (B, 1) and out_td.shape == (B, 1)
    # Tolerance covers bf16 operand rounding (mirrored in the reference) plus
    # MXU-vs-XLA accumulation-order differences.
    assert jnp.allclose(out_ds, ref_ds, atol=2e-4, rtol=2e-4)
    assert jnp.allclose(out_sa, ref_sa, atol=2e-4, rtol=2e-4)
    assert jnp.allclose(out_td, ref_td, atol=2e-4, rtol=2e-4)

    print("KERNEL_OK")
</pallas_src>

<mosaic_0001>
module attributes {stable_mosaic.version = 11 : i64} {
  func.func @propnet3_kernel(%arg0: i32, %arg1: memref<8x1152xbf16, #tpu.memory_space<vmem>>, %arg2: memref<1152x384xbf16, #tpu.memory_space<vmem>>, %arg3: memref<1x384xf32, #tpu.memory_space<vmem>>, %arg4: memref<384x96xbf16, #tpu.memory_space<vmem>>, %arg5: memref<1x96xf32, #tpu.memory_space<vmem>>, %arg6: memref<96x128xf32, #tpu.memory_space<vmem>>, %arg7: memref<1x128xf32, #tpu.memory_space<vmem>>, %arg8: memref<8x128xf32, #tpu.memory_space<vmem>>) attributes {dimension_semantics = [#tpu.dimension_semantics<parallel>], iteration_bounds = array<i64: 1>, scalar_prefetch = 0 : i64, scratch_operands = 0 : i64, tpu.core_type = #tpu.core_type<tc>, window_params = [{transform_indices = @transform_0, window_bounds = array<i64: 8, 1152>}, {pipeline_mode = #tpu.pipeline_mode<synchronous>, transform_indices = @transform_1, window_bounds = array<i64: 1152, 384>}, {pipeline_mode = #tpu.pipeline_mode<synchronous>, transform_indices = @transform_2, window_bounds = array<i64: 1, 384>}, {pipeline_mode = #tpu.pipeline_mode<synchronous>, transform_indices = @transform_3, window_bounds = array<i64: 384, 96>}, {pipeline_mode = #tpu.pipeline_mode<synchronous>, transform_indices = @transform_4, window_bounds = array<i64: 1, 96>}, {pipeline_mode = #tpu.pipeline_mode<synchronous>, transform_indices = @transform_5, window_bounds = array<i64: 96, 128>}, {pipeline_mode = #tpu.pipeline_mode<synchronous>, transform_indices = @transform_6, window_bounds = array<i64: 1, 128>}, {transform_indices = @transform_7, window_bounds = array<i64: 8, 128>}]} {
    %c0 = arith.constant 0 : index
    %c0_0 = arith.constant 0 : index
    %0 = vector.load %arg1[%c0, %c0_0] : memref<8x1152xbf16, #tpu.memory_space<vmem>>, vector<8x1152xbf16>
    %c0_1 = arith.constant 0 : index
    %c0_2 = arith.constant 0 : index
    %1 = vector.load %arg2[%c0_1, %c0_2] : memref<1152x384xbf16, #tpu.memory_space<vmem>>, vector<1152x384xbf16>
    %cst = arith.constant dense<0.000000e+00> : vector<8x384xf32>
    %2 = tpu.matmul %0, %1, %cst {dimension_numbers = #tpu.dot_dimension_numbers<[1], [0], [0], [1], [0, 0, 1, 1], [], []>} : vector<8x1152xbf16>, vector<1152x384xbf16>, vector<8x384xf32> -> vector<8x384xf32>
    %c0_3 = arith.constant 0 : index
    %c0_4 = arith.constant 0 : index
    %3 = vector.load %arg3[%c0_3, %c0_4] : memref<1x384xf32, #tpu.memory_space<vmem>>, vector<1x384xf32>
    %4 = vector.broadcast %3 : vector<1x384xf32> to vector<8x384xf32>
    %5 = arith.addf %2, %4 : vector<8x384xf32>
    %6 = math.tanh %5 : vector<8x384xf32>
    %7 = arith.truncf %6 : vector<8x384xf32> to vector<8x384xbf16>
    %c0_5 = arith.constant 0 : index
    %c0_6 = arith.constant 0 : index
    %8 = vector.load %arg4[%c0_5, %c0_6] : memref<384x96xbf16, #tpu.memory_space<vmem>>, vector<384x96xbf16>
    %cst_7 = arith.constant dense<0.000000e+00> : vector<8x96xf32>
    %9 = tpu.matmul %7, %8, %cst_7 {dimension_numbers = #tpu.dot_dimension_numbers<[1], [0], [0], [1], [0, 0, 1, 1], [], []>} : vector<8x384xbf16>, vector<384x96xbf16>, vector<8x96xf32> -> vector<8x96xf32>
    %c0_8 = arith.constant 0 : index
    %c0_9 = arith.constant 0 : index
    %10 = vector.load %arg5[%c0_8, %c0_9] : memref<1x96xf32, #tpu.memory_space<vmem>>, vector<1x96xf32>
    %11 = vector.broadcast %10 : vector<1x96xf32> to vector<8x96xf32>
    %12 = arith.addf %9, %11 : vector<8x96xf32>
    %13 = math.tanh %12 : vector<8x96xf32>
    %c0_10 = arith.constant 0 : index
    %c0_11 = arith.constant 0 : index
    %14 = vector.load %arg6[%c0_10, %c0_11] : memref<96x128xf32, #tpu.memory_space<vmem>>, vector<96x128xf32>
    %cst_12 = arith.constant dense<0.000000e+00> : vector<8x128xf32>
    %15 = tpu.matmul %13, %14, %cst_12 {dimension_numbers = #tpu.dot_dimension_numbers<[1], [0], [0], [1], [0, 0, 1, 1], [], []>} : vector<8x96xf32>, vector<96x128xf32>, vector<8x128xf32> -> vector<8x128xf32>
    %c0_13 = arith.constant 0 : index
    %c0_14 = arith.constant 0 : index
    %16 = vector.load %arg7[%c0_13, %c0_14] : memref<1x128xf32, #tpu.memory_space<vmem>>, vector<1x128xf32>
    %17 = vector.broadcast %16 : vector<1x128xf32> to vector<8x128xf32>
    %18 = arith.addf %15, %17 : vector<8x128xf32>
    %c0_15 = arith.constant 0 : index
    %c0_16 = arith.constant 0 : index
    %19 = vector.load %arg8[%c0_15, %c0_16] : memref<8x128xf32, #tpu.memory_space<vmem>>, vector<8x128xf32>
    tpu.vector_store %arg8[%c0_15, %c0_16], %18 {strides = array<i32>} : memref<8x128xf32, #tpu.memory_space<vmem>>, vector<8x128xf32>,
    return
  }
  func.func @transform_0(%arg0: i32) -> (i32, i32) {
    %c0_i32 = arith.constant 0 : i32
    %c0_i32_0 = arith.constant 0 : i32
    return %arg0, %c0_i32 : i32, i32
  }
  func.func @transform_1(%arg0: i32) -> (i32, i32) {
    %c0_i32 = arith.constant 0 : i32
    %c0_i32_0 = arith.constant 0 : i32
    %c0_i32_1 = arith.constant 0 : i32
    return %c0_i32, %c0_i32_0 : i32, i32
  }
  func.func @transform_2(%arg0: i32) -> (i32, i32) {
    %c0_i32 = arith.constant 0 : i32
    %c0_i32_0 = arith.constant 0 : i32
    %c0_i32_1 = arith.constant 0 : i32
    return %c0_i32, %c0_i32_0 : i32, i32
  }
  func.func @transform_3(%arg0: i32) -> (i32, i32) {
    %c0_i32 = arith.constant 0 : i32
    %c0_i32_0 = arith.constant 0 : i32
    %c0_i32_1 = arith.constant 0 : i32
    return %c0_i32, %c0_i32_0 : i32, i32
  }
  func.func @transform_4(%arg0: i32) -> (i32, i32) {
    %c0_i32 = arith.constant 0 : i32
    %c0_i32_0 = arith.constant 0 : i32
    %c0_i32_1 = arith.constant 0 : i32
    return %c0_i32, %c0_i32_0 : i32, i32
  }
  func.func @transform_5(%arg0: i32) -> (i32, i32) {
    %c0_i32 = arith.constant 0 : i32
    %c0_i32_0 = arith.constant 0 : i32
    %c0_i32_1 = arith.constant 0 : i32
    return %c0_i32, %c0_i32_0 : i32, i32
  }
  func.func @transform_6(%arg0: i32) -> (i32, i32) {
    %c0_i32 = arith.constant 0 : i32
    %c0_i32_0 = arith.constant 0 : i32
    %c0_i32_1 = arith.constant 0 : i32
    return %c0_i32, %c0_i32_0 : i32, i32
  }
  func.func @transform_7(%arg0: i32) -> (i32, i32) {
    %c0_i32 = arith.constant 0 : i32
    %c0_i32_0 = arith.constant 0 : i32
    return %arg0, %c0_i32 : i32, i32
  }
}

</mosaic_0001>

<bundles_post_ra>
// kernel: tpu_custom_call.1
= control target key start
LH: loop header
LB: loop body
LE: loop exit
PB: predicated region body
PF: predicated region fallthrough
CT: control target
= control target key end

     0   :  { %12 = vsyncpa [#allocation3], 0  ;;  %s3471_s0 = inlined_call_operand.vmem [shape: bf16[8,1152], index: 0, kind: input, shape index: {}]   ;;  %s3472_s1 = inlined_call_operand.hbm [shape: bf16[1152,384], index: 1, kind: input, shape index: {}]   ;;  %s3473_s2 = inlined_call_operand.vmem [shape: f32[1,384], index: 2, kind: input, shape index: {}]   ;;  %s3474_s3 = inlined_call_operand.vmem [shape: bf16[384,96], index: 3, kind: input, shape index: {}]   ;;  %s3475_s4 = inlined_call_operand.vmem [shape: f32[1,96], index: 4, kind: input, shape index: {}]   ;;  %s3476_s5 = inlined_call_operand.vmem [shape: f32[96,128], index: 5, kind: input, shape index: {}]   ;;  %s3477_s6 = inlined_call_operand.vmem [shape: f32[1,128], index: 6, kind: input, shape index: {}]   ;;  %s3478_s7 = inlined_call_operand.hbm [shape: f32[8,128], index: 7, kind: output, shape index: {}]  }
   0x1   :  { %13 = vsyncpa [#allocation4], 0  ;;  %s3216_s24 = smov [#allocation2]   ;;  %s3168_s28 = scalar_lea.hbm %s3472_s1, 27648 }
   0x2   :  { %s21_s25 = sshll.u32 %s3216_s24, 4  ;;  %p3169_p0 = scmp.ne.s32.totalorder %s3472_s1, %s3168_s28  ;;  %s22_s25 = int_to_ptr.vmem [resolvable:$true] %s21_s25 }
   0x3   :  { %p3172_p1 = scmp.lt.u32.totalorder %s3168_s28, %s3472_s1 }
   0x5   :  { %p3174_p2 = pnand %p3172_p1, %p3169_p0 }
   0x7   :  { %3177 = shalt.err (!%p3174_p2)
}
   0x8   :  { %s3178_s10 = scalar_lea.vmem %s22_s25, 27648  ;;  %p3183_p4 = scmp.lt.s32.totalorder %s22_s25, %s22_s25 }
   0x9   :  { %p3179_p3 = scmp.ne.s32.totalorder %s22_s25, %s3178_s10  ;;  %p3184_p5 = scmp.lt.s32.totalorder %s3178_s10, %s3178_s10 }
   0xb   :  { %p3185_p6 = por %p3184_p5, %p3183_p4 }
   0xd   :  { %p3186_p7 = pnand %p3185_p6, %p3179_p3 }
   0xf   :  { %3189 = shalt.err (!%p3186_p7)
}
  0x10   :  { %s3217_s11 = smov 192   ;;  %s3218_s12 = smov 12  }
  0x11   :  { %27 = dma.hbm_to_vmem [thread:$0]  %s3472_s1, 27648, %s22_s25, [#allocation3], %s3217_s11, %s3217_s11, %s3218_s12  }
  0x12   :  { %3212 = dma.done.wait [#allocation3], 27648  }
  0x13   :  { %3213 = vsyncadd [#allocation3], 4294939648  ;;  %v3219_v0 = vmov 0   ;;  %v2838_v1 = vld [vmem:[#allocation2 + $0x4] ss:$12 sps:$4 sm:$0xff]   ;;  %vm3221_vm0 = vmmov 0  }
  0x14   :  { %1732 = vmatprep.mubr.bf16.mxu1 %v3219_v0  ;;  %v2840_v2 = vld [vmem:[#allocation2 + $0x604] ss:$12 sps:$4 sm:$0xff]   ;;  %1536 = vmatprep.subr.bf16.mxu0 %v2838_v1  ;;  %v2842_v3 = vld [vmem:[#allocation2] ss:$12 sps:$4 sm:$0xff]   ;;  %v2844_v5 = vld [vmem:[#allocation2 + $0x1c] ss:$12 sps:$4 sm:$0xff]  }
  0x15   :  { %v2843_v4 = vld [vmem:[#allocation2 + $0x600] ss:$12 sps:$4 sm:$0xff]   ;;  %1700 = vmatprep.subr.bf16.mxu1 %v2840_v2  ;;  %1537 = vmatpush1.bf16.msra.mxu0 %v2842_v3  ;;  %v2846_v6 = vld [vmem:[#allocation2 + $0x61c] ss:$12 sps:$4 sm:$0xff]   ;;  %v2848_v7 = vld [vmem:[#allocation2 + $0x18] ss:$12 sps:$4 sm:$0xff]  }
  0x16   :  { %1701 = vmatpush1.bf16.msra.mxu1 %v2843_v4  ;;  %1538 = vmatprep.subr.bf16.mxu0 %v2844_v5  ;;  %v2849_v8 = vld [vmem:[#allocation2 + $0x618] ss:$12 sps:$4 sm:$0xff]   ;;  %v2850_v9 = vld [vmem:[#allocation2 + $0x34] ss:$12 sps:$4 sm:$0xff]   ;;  %v2854_v11 = vld [vmem:[#allocation2 + $0x30] ss:$12 sps:$4 sm:$0xff]  }
  0x17   :  { %1702 = vmatprep.subr.bf16.mxu1 %v2846_v6  ;;  %v2852_v10 = vld [vmem:[#allocation2 + $0x634] ss:$12 sps:$4 sm:$0xff]   ;;  %v2855_v12 = vld [vmem:[#allocation2 + $0x630] ss:$12 sps:$4 sm:$0xff]   ;;  %v2856_v13 = vld [vmem:[#allocation2 + $0x4c] ss:$12 sps:$4 sm:$0xff]  }
  0x18   :  { %v2858_v14 = vld [vmem:[#allocation2 + $0x64c] ss:$12 sps:$4 sm:$0xff]   ;;  %v2860_v15 = vld [vmem:[#allocation2 + $0x48] ss:$12 sps:$4 sm:$0xff]   ;;  %v2862_v17 = vld [vmem:[#allocation2 + $0x64] ss:$12 sps:$4 sm:$0xff]  }
  0x19   :  { %1539 = vmatpush1.bf16.msra.mxu0 %v2848_v7  ;;  %v2861_v16 = vld [vmem:[#allocation2 + $0x648] ss:$12 sps:$4 sm:$0xff]   ;;  %v2864_v18 = vld [vmem:[#allocation2 + $0x664] ss:$12 sps:$4 sm:$0xff]   ;;  %v2866_v19 = vld [vmem:[#allocation2 + $0x60] ss:$12 sps:$4 sm:$0xff]  }
  0x1a   :  { %1703 = vmatpush1.bf16.msra.mxu1 %v2849_v8  ;;  %1540 = vmatprep.subr.bf16.mxu0 %v2850_v9  ;;  %v2867_v20 = vld [vmem:[#allocation2 + $0x660] ss:$12 sps:$4 sm:$0xff]   ;;  %v2868_v21 = vld [vmem:[#allocation2 + $0x7c] ss:$12 sps:$4 sm:$0xff]   ;;  %v2872_v23 = vld [vmem:[#allocation2 + $0x78] ss:$12 sps:$4 sm:$0xff]  }
  0x1b   :  { %1704 = vmatprep.subr.bf16.mxu1 %v2852_v10  ;;  %v2870_v22 = vld [vmem:[#allocation2 + $0x67c] ss:$12 sps:$4 sm:$0xff]   ;;  %v2873_v24 = vld [vmem:[#allocation2 + $0x678] ss:$12 sps:$4 sm:$0xff]   ;;  %v2874_v25 = vld [vmem:[#allocation2 + $0x94] ss:$12 sps:$4 sm:$0xff]  }
  0x1c   :  { %v2876_v26 = vld [vmem:[#allocation2 + $0x694] ss:$12 sps:$4 sm:$0xff]   ;;  %v2878_v27 = vld [vmem:[#allocation2 + $0x90] ss:$12 sps:$4 sm:$0xff]   ;;  %v2880_v29 = vld [vmem:[#allocation2 + $0xac] ss:$12 sps:$4 sm:$0xff]  }
  0x1d   :  { %1541 = vmatpush1.bf16.msra.mxu0 %v2854_v11  ;;  %v2879_v28 = vld [vmem:[#allocation2 + $0x690] ss:$12 sps:$4 sm:$0xff]   ;;  %v2882_v30 = vld [vmem:[#allocation2 + $0x6ac] ss:$12 sps:$4 sm:$0xff]   ;;  %v2884_v31 = vld [vmem:[#allocation2 + $0xa8] ss:$12 sps:$4 sm:$0xff]  }
  0x1e   :  { %1705 = vmatpush1.bf16.msra.mxu1 %v2855_v12  ;;  %1542 = vmatprep.subr.bf16.mxu0 %v2856_v13  ;;  %v2885_v32 = vld [vmem:[#allocation2 + $0x6a8] ss:$12 sps:$4 sm:$0xff]   ;;  %v2886_v33 = vld [vmem:[#allocation2 + $0xc4] ss:$12 sps:$4 sm:$0xff]   ;;  %v2889_v35 = vld [vmem:[#allocation2 + $0xc0] ss:$12 sps:$4 sm:$0xff]  }
  0x1f   :  { %1706 = vmatprep.subr.bf16.mxu1 %v2858_v14  ;;  %v2888_v34 = vld [vmem:[#allocation2 + $0xc8] ss:$12 sps:$4 sm:$0xff]   ;;  %v2890_v36 = vld [vmem:[%s3471_s0 + $0x20] ss:$0 sps:$4 sm:$0xff]   ;;  %v2895_v40 = vld [vmem:[#allocation2 + $0xd8] ss:$12 sps:$4 sm:$0xff]  }
  0x20   :  { %v2891_v37 = vld [vmem:[#allocation2 + $0x8] ss:$12 sps:$4 sm:$0xff]   ;;  %v2894_v39 = vld [vmem:[#allocation2 + $0xe0] ss:$12 sps:$4 sm:$0xff]   ;;  %v2899_v43 = vld [vmem:[#allocation2 + $0xf8] ss:$12 sps:$4 sm:$0xff]  }
  0x21   :  { %1543 = vmatpush1.bf16.msra.mxu0 %v2860_v15  ;;  %v2892_v38 = vld [vmem:[#allocation2 + $0xdc] ss:$12 sps:$4 sm:$0xff]   ;;  %v2896_v41 = vld [vmem:[#allocation2 + $0x20] ss:$12 sps:$4 sm:$0xff]   ;;  %v2901_v45 = vld [vmem:[#allocation2 + $0x38] ss:$12 sps:$4 sm:$0xff]  }
  0x22   :  { %1707 = vmatpush1.bf16.msra.mxu1 %v2861_v16  ;;  %1544 = vmatprep.subr.bf16.mxu0 %v2862_v17  ;;  %v2897_v42 = vld [vmem:[#allocation2 + $0xf4] ss:$12 sps:$4 sm:$0xff]   ;;  %v2900_v44 = vld [vmem:[#allocation2 + $0xf0] ss:$12 sps:$4 sm:$0xff]   ;;  %v2902_v46 = vld [vmem:[#allocation2 + $0x10c] ss:$12 sps:$4 sm:$0xff]  }
  0x23   :  { %1708 = vmatprep.subr.bf16.mxu1 %v2864_v18  ;;  %v2904_v47 = vld [vmem:[#allocation2 + $0x110] ss:$12 sps:$4 sm:$0xff]   ;;  %v2905_v48 = vld [vmem:[#allocation2 + $0x108] ss:$12 sps:$4 sm:$0xff]   ;;  %v2910_v52 = vld [vmem:[#allocation2 + $0x120] ss:$12 sps:$4 sm:$0xff]  }
  0x24   :  { %v2906_v49 = vld [vmem:[#allocation2 + $0x50] ss:$12 sps:$4 sm:$0xff]   ;;  %v2909_v51 = vld [vmem:[#allocation2 + $0x128] ss:$12 sps:$4 sm:$0xff]   ;;  %v42_v55 = vld [vmem:[%s3471_s0] sm:$0xff]  ;;  %vm2246_vm1 = vcmask 785408  }
  0x25   :  { %1545 = vmatpush1.bf16.msra.mxu0 %v2866_v19  ;;  %v2907_v50 = vld [vmem:[#allocation2 + $0x124] ss:$12 sps:$4 sm:$0xff]   ;;  %v2911_v53 = vld [vmem:[#allocation2 + $0x68] ss:$12 sps:$4 sm:$0xff]   ;;  %v2914_v56 = vld [vmem:[#allocation2 + $0x140] ss:$12 sps:$4 sm:$0xff]   ;;  %v2337_v57 = vcombine.high %v42_v55, %v42_v55  ;;  %v2336_v6 = vcombine.low %v42_v55, %v42_v55 }
  0x26   :  { %1709 = vmatpush1.bf16.msra.mxu1 %v2867_v20  ;;  %1546 = vmatprep.subr.bf16.mxu0 %v2868_v21  ;;  %v2912_v54 = vld [vmem:[#allocation2 + $0x13c] ss:$12 sps:$4 sm:$0xff]   ;;  %v2915_v58 = vld [vmem:[#allocation2 + $0x138] ss:$12 sps:$4 sm:$0xff]   ;;  %v2916_v59 = vld [vmem:[#allocation2 + $0x80] ss:$12 sps:$4 sm:$0xff]  }
  0x27   :  { %1710 = vmatprep.subr.bf16.mxu1 %v2870_v22  ;;  %1568 = vmatprep.mubr.bf16.mxu0 %v2337_v57  ;;  %v2917_v60 = vld [vmem:[#allocation2 + $0x154] ss:$12 sps:$4 sm:$0xff]   ;;  %v2919_v61 = vld [vmem:[#allocation2 + $0x158] ss:$12 sps:$4 sm:$0xff]   ;;  %v2920_v62 = vld [vmem:[#allocation2 + $0x150] ss:$12 sps:$4 sm:$0xff]  }
  0x28   :  { %v2921_v63 = vld [vmem:[#allocation2 + $0x98] ss:$12 sps:$4 sm:$0xff]   ;;  %v2924_v1 = vld [vmem:[#allocation2 + $0x170] ss:$12 sps:$4 sm:$0xff]   ;;  %v2925_v2 = vld [vmem:[#allocation2 + $0x168] ss:$12 sps:$4 sm:$0xff]  }
  0x29   :  { %1547 = vmatpush1.bf16.msra.mxu0 %v2872_v23  ;;  %v2922_v0 = vld [vmem:[#allocation2 + $0x16c] ss:$12 sps:$4 sm:$0xff]   ;;  %v2926_v3 = vld [vmem:[#allocation2 + $0xb0] ss:$12 sps:$4 sm:$0xff]   ;;  %v2932_v5 = vld [vmem:[#allocation2 + $0x248] ss:$12 sps:$4 sm:$0xff]  }
  0x2a   :  { %1711 = vmatpush1.bf16.msra.mxu1 %v2873_v24  ;;  %1548 = vmatprep.subr.bf16.mxu0 %v2874_v25  ;;  %v2931_v4 = vld [vmem:[#allocation2 + $0x184] ss:$12 sps:$4 sm:$0xff]   ;;  %v2929_v7 = vld [vmem:[#allocation2 + $0x180] ss:$12 sps:$4 sm:$0xff]   ;;  %v2933_v8 = vld [vmem:[#allocation2 + $0x188] ss:$12 sps:$4 sm:$0xff]  }
  0x2b   :  { %1712 = vmatprep.subr.bf16.mxu1 %v2876_v26  ;;  %v2936_v9 = vld [vmem:[#allocation2 + $0x19c] ss:$12 sps:$4 sm:$0xff]   ;;  %v2937_v10 = vld [vmem:[#allocation2 + $0x260] ss:$12 sps:$4 sm:$0xff]   ;;  %v2934_v11 = vld [vmem:[#allocation2 + $0x198] ss:$12 sps:$4 sm:$0xff]  }
  0x2c   :  { %v2938_v12 = vld [vmem:[#allocation2 + $0x1a0] ss:$12 sps:$4 sm:$0xff]   ;;  %v2942_v14 = vld [vmem:[#allocation2 + $0x278] ss:$12 sps:$4 sm:$0xff]   ;;  %v2939_v15 = vld [vmem:[#allocation2 + $0x1b0] ss:$12 sps:$4 sm:$0xff]  }
  0x2d   :  { %1549 = vmatpush1.bf16.msra.mxu0 %v2878_v27  ;;  %v2941_v13 = vld [vmem:[#allocation2 + $0x1b4] ss:$12 sps:$4 sm:$0xff]   ;;  %v2943_v16 = vld [vmem:[#allocation2 + $0x1b8] ss:$12 sps:$4 sm:$0xff]   ;;  %v2947_v18 = vld [vmem:[#allocation2 + $0x290] ss:$12 sps:$4 sm:$0xff]  }
  0x2e   :  { %1713 = vmatpush1.bf16.msra.mxu1 %v2879_v28  ;;  %1550 = vmatprep.subr.bf16.mxu0 %v2880_v29  ;;  %v2946_v17 = vld [vmem:[#allocation2 + $0x1cc] ss:$12 sps:$4 sm:$0xff]   ;;  %v2944_v19 = vld [vmem:[#allocation2 + $0x1c8] ss:$12 sps:$4 sm:$0xff]   ;;  %v2948_v20 = vld [vmem:[#allocation2 + $0x1d0] ss:$12 sps:$4 sm:$0xff]  }
  0x2f   :  { %1714 = vmatprep.subr.bf16.mxu1 %v2882_v30  ;;  %v2951_v21 = vld [vmem:[#allocation2 + $0x1e4] ss:$12 sps:$4 sm:$0xff]   ;;  %v2952_v22 = vld [vmem:[#allocation2 + $0x2a8] ss:$12 sps:$4 sm:$0xff]   ;;  %v2949_v25 = vld [vmem:[#allocation2 + $0x1e0] ss:$12 sps:$4 sm:$0xff]  }
  0x30   :  { %v43_v23 = vld [vmem:[%s3471_s0 + $0x8] sm:$0xff]  ;;  %v2954_v29 = vld [vmem:[#allocation2 + $0x1f8] ss:$12 sps:$4 sm:$0xff]   ;;  %s3223_s24 = smov [#allocation5]  }
  0x31   :  { %1551 = vmatpush1.bf16.msra.mxu0 %v2884_v31  ;;  %v2339_v24 = vcombine.high %v43_v23, %v43_v23  ;;  %v2953_v26 = vld [vmem:[#allocation2 + $0x1e8] ss:$12 sps:$4 sm:$0xff]   ;;  %v2957_v28 = vld [vmem:[#allocation2 + $0x2c0] ss:$12 sps:$4 sm:$0xff]   ;;  %s2327_s25 = sshll.u32 %s3223_s24, 4  ;;  %s2328_s25 = int_to_ptr.vmem [resolvable:$true] %s2327_s25 }
  0x32   :  { %1715 = vmatpush1.bf16.msra.mxu1 %v2885_v32  ;;  %1552 = vmatprep.subr.bf16.mxu0 %v2886_v33  ;;  %v2956_v27 = vld [vmem:[#allocation2 + $0x1fc] ss:$12 sps:$4 sm:$0xff]   ;;  %v2958_v30 = vld [vmem:[#allocation2 + $0x200] ss:$12 sps:$4 sm:$0xff]   ;;  %v2962_v32 = vld [vmem:[#allocation2 + $0x2d8] ss:$12 sps:$4 sm:$0xff]   ;;  %p3195_p9 = scmp.lt.s32.totalorder %s2328_s25, %s2328_s25 }
  0x33   :  { %2588 = vmatprep.subr.bf16.mxu1 %v2888_v34  ;;  %v2961_v31 = vld [vmem:[#allocation2 + $0x214] ss:$12 sps:$4 sm:$0xff]   ;;  %v2959_v33 = vld [vmem:[#allocation2 + $0x210] ss:$12 sps:$4 sm:$0xff]   ;;  %v2963_v34 = vld [vmem:[#allocation2 + $0x218] ss:$12 sps:$4 sm:$0xff]  }
  0x35   :  { %1733 = vmatmul.mubr.bf16.vlgmr.msra.gmra.mrb[0].mxu1 %v2890_v36  ;;  %1553 = vmatpush1.bf16.msra.mxu0 %v2889_v35  ;;  %v2966_v35 = vld [vmem:[#allocation2 + $0x22c] ss:$12 sps:$4 sm:$0xff]   ;;  %v2967_v36 = vld [vmem:[#allocation2 + $0x2f0] ss:$12 sps:$4 sm:$0xff]  }
  0x36   :  { %2589 = vmatpush3.bf16.msra.mxu1 %v2891_v37  ;;  %1554 = vmatprep.subr.bf16.mxu0 %v2892_v38  ;;  %v2964_v37 = vld [vmem:[#allocation2 + $0x228] ss:$12 sps:$4 sm:$0xff]   ;;  %v2968_v38 = vld [vmem:[#allocation2 + $0x230] ss:$12 sps:$4 sm:$0xff]  }
  0x37   :  { %2590 = vmatprep.subr.bf16.mxu1 %v2894_v39  ;;  %1773 = vmatprep.mubr.bf16.mxu1 %v2337_v57  ;;  %v2971_v39 = vld [vmem:[#allocation2 + $0x244] ss:$12 sps:$4 sm:$0xff]  }
  0x38   :  { %v2990_v57 = vld [vmem:[#allocation2 + $0x350] ss:$12 sps:$4 sm:$0xff]  }
  0x39   :  { %1555 = vmatpush1.bf16.msra.mxu0 %v2895_v40  ;;  %v2974_v40 = vld [vmem:[#allocation2 + $0x3c8] ss:$12 sps:$4 sm:$0xff]  }
  0x3a   :  { %2591 = vmatpush3.bf16.msra.mxu1 %v2896_v41  ;;  %1556 = vmatprep.subr.bf16.mxu0 %v2897_v42  ;;  %v2969_v41 = vld [vmem:[#allocation2 + $0x240] ss:$12 sps:$4 sm:$0xff]   ;;  %v3285_v42 = vcombine.low %v43_v23, %v43_v23  ;;  %v3023_v23 = vld [vmem:[#allocation2 + $0x330] ss:$12 sps:$4 sm:$0xff]  }
  0x3b   :  { %2592 = vmatprep.subr.bf16.mxu1 %v2899_v43  ;;  %v2975_v43 = vld [vmem:[#allocation2 + $0x308] ss:$12 sps:$4 sm:$0xff]  }
  0x3d   :  { %1557 = vmatpush1.bf16.msra.mxu0 %v2900_v44  ;;  %v2978_v44 = vld [vmem:[#allocation2 + $0x25c] ss:$12 sps:$4 sm:$0xff]  }
  0x3e   :  { %2593 = vmatpush3.bf16.msra.mxu1 %v2901_v45  ;;  %1558 = vmatprep.subr.bf16.mxu0 %v2902_v46  ;;  %v2979_v45 = vld [vmem:[#allocation2 + $0x3e0] ss:$12 sps:$4 sm:$0xff]   ;;  %v2976_v46 = vld [vmem:[#allocation2 + $0x258] ss:$12 sps:$4 sm:$0xff]  }
  0x3f   :  { %2594 = vmatprep.subr.bf16.mxu1 %v2904_v47  ;;  %v2980_v47 = vld [vmem:[#allocation2 + $0x320] ss:$12 sps:$4 sm:$0xff]  }
  0x41   :  { %1559 = vmatpush1.bf16.msra.mxu0 %v2905_v48  ;;  %v2983_v48 = vld [vmem:[#allocation2 + $0x274] ss:$12 sps:$4 sm:$0xff]  }
  0x42   :  { %2595 = vmatpush3.bf16.msra.mxu1 %v2906_v49  ;;  %1560 = vmatprep.subr.bf16.mxu0 %v2907_v50  ;;  %v2984_v49 = vld [vmem:[#allocation2 + $0x3f8] ss:$12 sps:$4 sm:$0xff]   ;;  %v2981_v50 = vld [vmem:[#allocation2 + $0x270] ss:$12 sps:$4 sm:$0xff]  }
  0x43   :  { %2596 = vmatprep.subr.bf16.mxu1 %v2909_v51  ;;  %v2985_v51 = vld [vmem:[#allocation2 + $0x338] ss:$12 sps:$4 sm:$0xff]  }
  0x45   :  { %1561 = vmatpush1.bf16.msra.mxu0 %v2910_v52  ;;  %v2988_v52 = vld [vmem:[#allocation2 + $0x28c] ss:$12 sps:$4 sm:$0xff]  }
  0x46   :  { %2597 = vmatpush3.bf16.msra.mxu1 %v2911_v53  ;;  %1562 = vmatprep.subr.bf16.mxu0 %v2912_v54  ;;  %v44_v53 = vld [vmem:[%s3471_s0 + $0x10] sm:$0xff] }
  0x47   :  { %2598 = vmatprep.subr.bf16.mxu1 %v2914_v56  ;;  %v2989_v54 = vld [vmem:[#allocation2 + $0x410] ss:$12 sps:$4 sm:$0xff]   ;;  %v3291_v55 = vcombine.high %v44_v53, %v44_v53  ;;  %v2986_v56 = vld [vmem:[#allocation2 + $0x288] ss:$12 sps:$4 sm:$0xff]  }
  0x49   :  { %1563 = vmatpush1.bf16.msra.mxu0 %v2915_v58  ;;  %v2993_v58 = vld [vmem:[#allocation2 + $0x2a4] ss:$12 sps:$4 sm:$0xff]  }
  0x4a   :  { %2599 = vmatpush3.bf16.msra.mxu1 %v2916_v59  ;;  %1564 = vmatprep.subr.bf16.mxu0 %v2917_v60  ;;  %v2994_v59 = vld [vmem:[#allocation2 + $0x428] ss:$12 sps:$4 sm:$0xff]   ;;  %v2991_v60 = vld [vmem:[#allocation2 + $0x2a0] ss:$12 sps:$4 sm:$0xff]  }
  0x4b   :  { %2600 = vmatprep.subr.bf16.mxu1 %v2919_v61  ;;  %v2995_v61 = vld [vmem:[#allocation2 + $0x368] ss:$12 sps:$4 sm:$0xff]  }
  0x4d   :  { %1565 = vmatpush1.bf16.msra.mxu0 %v2920_v62  ;;  %v2998_v62 = vld [vmem:[#allocation2 + $0x2bc] ss:$12 sps:$4 sm:$0xff]  }
  0x4e   :  { %2601 = vmatpush3.bf16.msra.mxu1 %v2921_v63  ;;  %1566 = vmatprep.subr.bf16.mxu0 %v2922_v0  ;;  %v2999_v63 = vld [vmem:[#allocation2 + $0x440] ss:$12 sps:$4 sm:$0xff]   ;;  %v2996_v0 = vld [vmem:[#allocation2 + $0x2b8] ss:$12 sps:$4 sm:$0xff]  }
  0x4f   :  { %2602 = vmatprep.subr.bf16.mxu1 %v2924_v1  ;;  %v3000_v1 = vld [vmem:[#allocation2 + $0x380] ss:$12 sps:$4 sm:$0xff]  }
  0x51   :  { %1567 = vmatpush1.bf16.msra.mxu0 %v2925_v2  ;;  %v3003_v2 = vld [vmem:[#allocation2 + $0x2d4] ss:$12 sps:$4 sm:$0xff]  }
  0x52   :  { %2603 = vmatpush3.bf16.msra.mxu1 %v2926_v3  ;;  %1577 = vmatprep.subr.bf16.mxu0 %v2931_v4  ;;  %v3004_v3 = vld [vmem:[#allocation2 + $0x458] ss:$12 sps:$4 sm:$0xff]   ;;  %v3001_v4 = vld [vmem:[#allocation2 + $0x2d0] ss:$12 sps:$4 sm:$0xff]  }
  0x53   :  { %2610 = vmatprep.subr.bf16.mxu1 %v2932_v5  ;;  %v3005_v5 = vld [vmem:[#allocation2 + $0x398] ss:$12 sps:$4 sm:$0xff]  }
  0x54   :  { %1569 = vmatmul.mubr.bf16.vlgmr.msra.gmra.mrb[0].mxu0 %v2336_v6 }
  0x55   :  { %1774 = vmatmul.mubr.bf16.vlgmr.msra.gmra.mrb[4].mxu1 %v2336_v6  ;;  %1578 = vmatpush1.bf16.msra.mxu0 %v2929_v7  ;;  %v3008_v6 = vld [vmem:[#allocation2 + $0x2ec] ss:$12 sps:$4 sm:$0xff]   ;;  %v3009_v7 = vld [vmem:[#allocation2 + $0x470] ss:$12 sps:$4 sm:$0xff]  }
  0x56   :  { %2611 = vmatpush3.bf16.msra.mxu1 %v2933_v8  ;;  %1579 = vmatprep.subr.bf16.mxu0 %v2936_v9  ;;  %v3006_v8 = vld [vmem:[#allocation2 + $0x2e8] ss:$12 sps:$4 sm:$0xff]   ;;  %v3010_v9 = vld [vmem:[#allocation2 + $0x3b0] ss:$12 sps:$4 sm:$0xff]  }
  0x57   :  { %2612 = vmatprep.subr.bf16.mxu1 %v2937_v10  ;;  %1813 = vmatprep.mubr.bf16.mxu1 %v2339_v24  ;;  %v3013_v10 = vld [vmem:[#allocation2 + $0x304] ss:$12 sps:$4 sm:$0xff]  }
  0x58   :  { %1609 = vmatprep.mubr.bf16.mxu0 %v2339_v24  ;;  %v3027_v24 = vld [vmem:[#allocation2 + $0x4b8] ss:$12 sps:$4 sm:$0xff]  }
  0x59   :  { %1580 = vmatpush1.bf16.msra.mxu0 %v2934_v11  ;;  %v3016_v11 = vld [vmem:[#allocation2 + $0x548] ss:$12 sps:$4 sm:$0xff]  }
  0x5a   :  { %2613 = vmatpush3.bf16.msra.mxu1 %v2938_v12  ;;  %1581 = vmatprep.subr.bf16.mxu0 %v2941_v13  ;;  %v3011_v12 = vld [vmem:[#allocation2 + $0x300] ss:$12 sps:$4 sm:$0xff]   ;;  %v3294_v13 = vcombine.low %v44_v53, %v44_v53 }
  0x5b   :  { %2614 = vmatprep.subr.bf16.mxu1 %v2942_v14  ;;  %v3017_v14 = vld [vmem:[#allocation2 + $0x488] ss:$12 sps:$4 sm:$0xff]  }
  0x5c   :  { %v3065_v53 = vld [vmem:[#allocation2 + $0x3f4] ss:$12 sps:$4 sm:$0xff]  }
  0x5d   :  { %1582 = vmatpush1.bf16.msra.mxu0 %v2939_v15  ;;  %v3020_v15 = vld [vmem:[#allocation2 + $0x31c] ss:$12 sps:$4 sm:$0xff]  }
  0x5e   :  { %2615 = vmatpush3.bf16.msra.mxu1 %v2943_v16  ;;  %1583 = vmatprep.subr.bf16.mxu0 %v2946_v17  ;;  %v3021_v16 = vld [vmem:[#allocation2 + $0x560] ss:$12 sps:$4 sm:$0xff]   ;;  %v3018_v17 = vld [vmem:[#allocation2 + $0x318] ss:$12 sps:$4 sm:$0xff]  }
  0x5f   :  { %2616 = vmatprep.subr.bf16.mxu1 %v2947_v18  ;;  %v45_v18 = vld [vmem:[%s3471_s0 + $0x18] sm:$0xff] }
  0x61   :  { %1584 = vmatpush1.bf16.msra.mxu0 %v2944_v19  ;;  %v3022_v19 = vld [vmem:[#allocation2 + $0x4a0] ss:$12 sps:$4 sm:$0xff]  }
  0x62   :  { %2617 = vmatpush3.bf16.msra.mxu1 %v2948_v20  ;;  %1585 = vmatprep.subr.bf16.mxu0 %v2951_v21  ;;  %v3301_v20 = vcombine.high %v45_v18, %v45_v18  ;;  %v3025_v21 = vld [vmem:[#allocation2 + $0x334] ss:$12 sps:$4 sm:$0xff]  }
  0x63   :  { %2618 = vmatprep.subr.bf16.mxu1 %v2952_v22  ;;  %v3026_v22 = vld [vmem:[#allocation2 + $0x578] ss:$12 sps:$4 sm:$0xff]  }
  0x65   :  { %1586 = vmatpush1.bf16.msra.mxu0 %v2949_v25  ;;  %v3030_v25 = vld [vmem:[#allocation2 + $0x34c] ss:$12 sps:$4 sm:$0xff]  }
  0x66   :  { %2619 = vmatpush3.bf16.msra.mxu1 %v2953_v26  ;;  %1587 = vmatprep.subr.bf16.mxu0 %v2956_v27  ;;  %v3031_v26 = vld [vmem:[#allocation2 + $0x590] ss:$12 sps:$4 sm:$0xff]   ;;  %v3028_v27 = vld [vmem:[#allocation2 + $0x348] ss:$12 sps:$4 sm:$0xff]  }
  0x67   :  { %2620 = vmatprep.subr.bf16.mxu1 %v2957_v28  ;;  %v3032_v28 = vld [vmem:[#allocation2 + $0x4d0] ss:$12 sps:$4 sm:$0xff]  }
  0x69   :  { %1588 = vmatpush1.bf16.msra.mxu0 %v2954_v29  ;;  %v3035_v29 = vld [vmem:[#allocation2 + $0x364] ss:$12 sps:$4 sm:$0xff]  }
  0x6a   :  { %2621 = vmatpush3.bf16.msra.mxu1 %v2958_v30  ;;  %1589 = vmatprep.subr.bf16.mxu0 %v2961_v31  ;;  %v3036_v30 = vld [vmem:[#allocation2 + $0x5a8] ss:$12 sps:$4 sm:$0xff]   ;;  %v3033_v31 = vld [vmem:[#allocation2 + $0x360] ss:$12 sps:$4 sm:$0xff]  }
  0x6b   :  { %2622 = vmatprep.subr.bf16.mxu1 %v2962_v32  ;;  %v3037_v32 = vld [vmem:[#allocation2 + $0x4e8] ss:$12 sps:$4 sm:$0xff]  }
  0x6d   :  { %1590 = vmatpush1.bf16.msra.mxu0 %v2959_v33  ;;  %v3040_v33 = vld [vmem:[#allocation2 + $0x37c] ss:$12 sps:$4 sm:$0xff]  }
  0x6e   :  { %2623 = vmatpush3.bf16.msra.mxu1 %v2963_v34  ;;  %1591 = vmatprep.subr.bf16.mxu0 %v2966_v35  ;;  %v3041_v34 = vld [vmem:[#allocation2 + $0x5c0] ss:$12 sps:$4 sm:$0xff]   ;;  %v3038_v35 = vld [vmem:[#allocation2 + $0x378] ss:$12 sps:$4 sm:$0xff]  }
  0x6f   :  { %2624 = vmatprep.subr.bf16.mxu1 %v2967_v36  ;;  %v3042_v36 = vld [vmem:[#allocation2 + $0x500] ss:$12 sps:$4 sm:$0xff]  }
  0x71   :  { %1592 = vmatpush1.bf16.msra.mxu0 %v2964_v37  ;;  %v3045_v37 = vld [vmem:[#allocation2 + $0x394] ss:$12 sps:$4 sm:$0xff]  }
  0x72   :  { %2625 = vmatpush3.bf16.msra.mxu1 %v2968_v38  ;;  %1593 = vmatprep.subr.bf16.mxu0 %v2971_v39  ;;  %v3046_v38 = vld [vmem:[#allocation2 + $0x5d8] ss:$12 sps:$4 sm:$0xff]   ;;  %v3043_v39 = vld [vmem:[#allocation2 + $0x390] ss:$12 sps:$4 sm:$0xff]  }
  0x73   :  { %2632 = vmatprep.subr.bf16.mxu1 %v2974_v40  ;;  %v3047_v40 = vld [vmem:[#allocation2 + $0x518] ss:$12 sps:$4 sm:$0xff]  }
  0x75   :  { %1814 = vmatmul.mubr.bf16.vlgmr.msra.gmra.mrb[8].mxu1 %v3285_v42  ;;  %1594 = vmatpush1.bf16.msra.mxu0 %v2969_v41  ;;  %v3050_v41 = vld [vmem:[#allocation2 + $0x3ac] ss:$12 sps:$4 sm:$0xff]  }
  0x76   :  { %2633 = vmatpush3.bf16.msra.mxu1 %v2975_v43  ;;  %1595 = vmatprep.subr.bf16.mxu0 %v2978_v44  ;;  %v3048_v43 = vld [vmem:[#allocation2 + $0x3a8] ss:$12 sps:$4 sm:$0xff]   ;;  %v3052_v44 = vld [vmem:[#allocation2 + $0x530] ss:$12 sps:$4 sm:$0xff]  }
  0x77   :  { %2634 = vmatprep.subr.bf16.mxu1 %v2979_v45  ;;  %1853 = vmatprep.mubr.bf16.mxu1 %v3291_v55  ;;  %v3055_v45 = vld [vmem:[#allocation2 + $0x3c4] ss:$12 sps:$4 sm:$0xff]  }
  0x79   :  { %1596 = vmatpush1.bf16.msra.mxu0 %v2976_v46  ;;  %v3305_v46 = vcombine.low %v45_v18, %v45_v18  ;;  %v3099_v18 = vld [vmem:[#allocation2 + $0x4e0] ss:$12 sps:$4 sm:$0xff]  }
  0x7a   :  { %2635 = vmatpush3.bf16.msra.mxu1 %v2980_v47  ;;  %1597 = vmatprep.subr.bf16.mxu0 %v2983_v48  ;;  %v3053_v47 = vld [vmem:[#allocation2 + $0x3c0] ss:$12 sps:$4 sm:$0xff]   ;;  %v3058_v48 = vld [vmem:[#allocation2 + $0x608] ss:$12 sps:$4 sm:$0xff]  }
  0x7b   :  { %2636 = vmatprep.subr.bf16.mxu1 %v2984_v49  ;;  %v3220_v49 = vmov 0.0  }
  0x7d   :  { %1598 = vmatpush1.bf16.msra.mxu0 %v2981_v50  ;;  %v3061_v50 = vld [vmem:[#allocation2 + $0x3dc] ss:$12 sps:$4 sm:$0xff]  }
  0x7e   :  { %2637 = vmatpush3.bf16.msra.mxu1 %v2985_v51  ;;  %1599 = vmatprep.subr.bf16.mxu0 %v2988_v52  ;;  %v3059_v51 = vld [vmem:[#allocation2 + $0x3d8] ss:$12 sps:$4 sm:$0xff]   ;;  %v3062_v52 = vld [vmem:[#allocation2 + $0x620] ss:$12 sps:$4 sm:$0xff]  }
  0x7f   :  { %2638 = vmatprep.subr.bf16.mxu1 %v2989_v54  ;;  %v3063_v54 = vld [vmem:[#allocation2 + $0x3f0] ss:$12 sps:$4 sm:$0xff]  }
  0x81   :  { %1600 = vmatpush1.bf16.msra.mxu0 %v2986_v56  ;;  %v3069_v56 = vld [vmem:[#allocation2 + $0x40c] ss:$12 sps:$4 sm:$0xff]  }
  0x82   :  { %2639 = vmatpush3.bf16.msra.mxu1 %v2990_v57  ;;  %1601 = vmatprep.subr.bf16.mxu0 %v2993_v58  ;;  %v3067_v57 = vld [vmem:[#allocation2 + $0x408] ss:$12 sps:$4 sm:$0xff]   ;;  %v3070_v58 = vld [vmem:[#allocation2 + $0x650] ss:$12 sps:$4 sm:$0xff]  }
  0x83   :  { %2640 = vmatprep.subr.bf16.mxu1 %v2994_v59  ;;  %v3073_v59 = vld [vmem:[#allocation2 + $0x424] ss:$12 sps:$4 sm:$0xff]  }
  0x85   :  { %1602 = vmatpush1.bf16.msra.mxu0 %v2991_v60  ;;  %v3071_v60 = vld [vmem:[#allocation2 + $0x420] ss:$12 sps:$4 sm:$0xff]  }
  0x86   :  { %2641 = vmatpush3.bf16.msra.mxu1 %v2995_v61  ;;  %1603 = vmatprep.subr.bf16.mxu0 %v2998_v62  ;;  %v3074_v61 = vld [vmem:[#allocation2 + $0x668] ss:$12 sps:$4 sm:$0xff]  }
  0x87   :  { %2642 = vmatprep.subr.bf16.mxu1 %v2999_v63  ;;  %v3077_v62 = vld [vmem:[#allocation2 + $0x43c] ss:$12 sps:$4 sm:$0xff]   ;;  %v3075_v63 = vld [vmem:[#allocation2 + $0x438] ss:$12 sps:$4 sm:$0xff]  }
  0x89   :  { %1604 = vmatpush1.bf16.msra.mxu0 %v2996_v0  ;;  %v3078_v0 = vld [vmem:[#allocation2 + $0x680] ss:$12 sps:$4 sm:$0xff]  }
  0x8a   :  { %2643 = vmatpush3.bf16.msra.mxu1 %v3000_v1  ;;  %1605 = vmatprep.subr.bf16.mxu0 %v3003_v2  ;;  %v3081_v1 = vld [vmem:[#allocation2 + $0x454] ss:$12 sps:$4 sm:$0xff]   ;;  %v3079_v2 = vld [vmem:[#allocation2 + $0x450] ss:$12 sps:$4 sm:$0xff]  }
  0x8b   :  { %2644 = vmatprep.subr.bf16.mxu1 %v3004_v3  ;;  %v3082_v3 = vld [vmem:[#allocation2 + $0x698] ss:$12 sps:$4 sm:$0xff]  }
  0x8d   :  { %1606 = vmatpush1.bf16.msra.mxu0 %v3001_v4  ;;  %v3085_v4 = vld [vmem:[#allocation2 + $0x46c] ss:$12 sps:$4 sm:$0xff]  }
  0x8e   :  { %2645 = vmatpush3.bf16.msra.mxu1 %v3005_v5  ;;  %1607 = vmatprep.subr.bf16.mxu0 %v3008_v6  ;;  %v3083_v5 = vld [vmem:[#allocation2 + $0x468] ss:$12 sps:$4 sm:$0xff]   ;;  %v3086_v6 = vld [vmem:[#allocation2 + $0x6b0] ss:$12 sps:$4 sm:$0xff]  }
  0x8f   :  { %2646 = vmatprep.subr.bf16.mxu1 %v3009_v7  ;;  %v3089_v7 = vld [vmem:[#allocation2 + $0x484] ss:$12 sps:$4 sm:$0xff]  }
  0x91   :  { %1608 = vmatpush1.bf16.msra.mxu0 %v3006_v8  ;;  %v3087_v8 = vld [vmem:[#allocation2 + $0x480] ss:$12 sps:$4 sm:$0xff]  }
  0x92   :  { %2647 = vmatpush3.bf16.msra.mxu1 %v3010_v9  ;;  %1618 = vmatprep.subr.bf16.mxu0 %v3013_v10  ;;  %v3092_v9 = vld [vmem:[#allocation2 + $0x49c] ss:$12 sps:$4 sm:$0xff]   ;;  %v3167_v10 = vld [vmem:[%s3471_s0 + $0x20] ss:$0 sps:$4 sm:$0xff]  }
  0x93   :  { %2654 = vmatprep.subr.bf16.mxu1 %v3016_v11  ;;  %v3090_v11 = vld [vmem:[#allocation2 + $0x498] ss:$12 sps:$4 sm:$0xff]  }
  0x94   :  { %1610 = vmatmul.mubr.bf16.vlgmr.msra.gmra.mrb[0].mxu0 %v3285_v42  ;;  %v3051_v42 = vld [vmem:[#allocation2 + $0x5f0] ss:$12 sps:$4 sm:$0xff]  }
  0x95   :  { %1854 = vmatmul.mubr.bf16.vlgmr.msra.gmra.mrb[12].mxu1 %v3294_v13  ;;  %1619 = vmatpush1.bf16.msra.mxu0 %v3011_v12  ;;  %v3095_v12 = vld [vmem:[#allocation2 + $0x4b4] ss:$12 sps:$4 sm:$0xff]  }
  0x96   :  { %2655 = vmatpush3.bf16.msra.mxu1 %v3017_v14  ;;  %1620 = vmatprep.subr.bf16.mxu0 %v3020_v15  ;;  %v3093_v14 = vld [vmem:[#allocation2 + $0x4b0] ss:$12 sps:$4 sm:$0xff]   ;;  %v3098_v15 = vld [vmem:[#allocation2 + $0x4cc] ss:$12 sps:$4 sm:$0xff]  }
  0x97   :  { %2656 = vmatprep.subr.bf16.mxu1 %v3021_v16  ;;  %1893 = vmatprep.mubr.bf16.mxu1 %v3301_v20  ;;  %v3096_v16 = vld [vmem:[#allocation2 + $0x4c8] ss:$12 sps:$4 sm:$0xff]  }
  0x98   :  { %1650 = vmatprep.mubr.bf16.mxu0 %v3291_v55  ;;  %v3066_v55 = vld [vmem:[#allocation2 + $0x638] ss:$12 sps:$4 sm:$0xff]  }
  0x99   :  { %1621 = vmatpush1.bf16.msra.mxu0 %v3018_v17  ;;  %v3101_v17 = vld [vmem:[#allocation2 + $0x4e4] ss:$12 sps:$4 sm:$0xff]  }
  0x9a   :  { %2657 = vmatpush3.bf16.msra.mxu1 %v3022_v19  ;;  %1622 = vmatprep.subr.bf16.mxu0 %v3025_v21  ;;  %v3104_v19 = vld [vmem:[#allocation2 + $0x4fc] ss:$12 sps:$4 sm:$0xff]   ;;  %v3107_v21 = vld [vmem:[#allocation2 + $0x514] ss:$12 sps:$4 sm:$0xff]  }
  0x9b   :  { %2658 = vmatprep.subr.bf16.mxu1 %v3026_v22  ;;  %v3110_v22 = vld [vmem:[#allocation2 + $0x52c] ss:$12 sps:$4 sm:$0xff]  }
  0x9d   :  { %1623 = vmatpush1.bf16.msra.mxu0 %v3023_v23  ;;  %v3108_v23 = vld [vmem:[#allocation2 + $0x528] ss:$12 sps:$4 sm:$0xff]  }
  0x9e   :  { %2659 = vmatpush3.bf16.msra.mxu1 %v3027_v24  ;;  %1624 = vmatprep.subr.bf16.mxu0 %v3030_v25  ;;  %v3113_v24 = vld [vmem:[#allocation2 + $0x544] ss:$12 sps:$4 sm:$0xff]   ;;  %v3111_v25 = vld [vmem:[#allocation2 + $0x540] ss:$12 sps:$4 sm:$0xff]  }
  0x9f   :  { %2660 = vmatprep.subr.bf16.mxu1 %v3031_v26  ;;  %v3116_v26 = vld [vmem:[#allocation2 + $0x55c] ss:$12 sps:$4 sm:$0xff]  }
  0xa1   :  { %1625 = vmatpush1.bf16.msra.mxu0 %v3028_v27  ;;  %v3114_v27 = vld [vmem:[#allocation2 + $0x558] ss:$12 sps:$4 sm:$0xff]  }
  0xa2   :  { %2661 = vmatpush3.bf16.msra.mxu1 %v3032_v28  ;;  %1626 = vmatprep.subr.bf16.mxu0 %v3035_v29  ;;  %v3119_v28 = vld [vmem:[#allocation2 + $0x574] ss:$12 sps:$4 sm:$0xff]   ;;  %v3117_v29 = vld [vmem:[#allocation2 + $0x570] ss:$12 sps:$4 sm:$0xff]  }
  0xa3   :  { %2662 = vmatprep.subr.bf16.mxu1 %v3036_v30  ;;  %v3122_v30 = vld [vmem:[#allocation2 + $0x58c] ss:$12 sps:$4 sm:$0xff]  }
  0xa5   :  { %1627 = vmatpush1.bf16.msra.mxu0 %v3033_v31  ;;  %v3120_v31 = vld [vmem:[#allocation2 + $0x588] ss:$12 sps:$4 sm:$0xff]  }
  0xa6   :  { %2663 = vmatpush3.bf16.msra.mxu1 %v3037_v32  ;;  %1628 = vmatprep.subr.bf16.mxu0 %v3040_v33  ;;  %v3125_v32 = vld [vmem:[#allocation2 + $0x5a4] ss:$12 sps:$4 sm:$0xff]   ;;  %v3123_v33 = vld [vmem:[#allocation2 + $0x5a0] ss:$12 sps:$4 sm:$0xff]  }
  0xa7   :  { %2664 = vmatprep.subr.bf16.mxu1 %v3041_v34  ;;  %v3128_v34 = vld [vmem:[#allocation2 + $0x5bc] ss:$12 sps:$4 sm:$0xff]  }
  0xa9   :  { %1629 = vmatpush1.bf16.msra.mxu0 %v3038_v35  ;;  %v3126_v35 = vld [vmem:[#allocation2 + $0x5b8] ss:$12 sps:$4 sm:$0xff]  }
  0xaa   :  { %2665 = vmatpush3.bf16.msra.mxu1 %v3042_v36  ;;  %1630 = vmatprep.subr.bf16.mxu0 %v3045_v37  ;;  %v3131_v36 = vld [vmem:[#allocation2 + $0x5d4] ss:$12 sps:$4 sm:$0xff]  }
  0xab   :  { %2666 = vmatprep.subr.bf16.mxu1 %v3046_v38 }
  0xad   :  { %1631 = vmatpush1.bf16.msra.mxu0 %v3043_v39  ;;  %v3129_v39 = vld [vmem:[#allocation2 + $0x5d0] ss:$12 sps:$4 sm:$0xff]  }
  0xae   :  { %2667 = vmatpush3.bf16.msra.mxu1 %v3047_v40  ;;  %1632 = vmatprep.subr.bf16.mxu0 %v3050_v41  ;;  %v3134_v41 = vld [vmem:[#allocation2 + $0x5ec] ss:$12 sps:$4 sm:$0xff]  }
  0xaf   :  { %2668 = vmatprep.subr.bf16.mxu1 %v3051_v42 }
  0xb1   :  { %1633 = vmatpush1.bf16.msra.mxu0 %v3048_v43  ;;  %v3132_v43 = vld [vmem:[#allocation2 + $0x5e8] ss:$12 sps:$4 sm:$0xff]  }
  0xb2   :  { %2669 = vmatpush3.bf16.msra.mxu1 %v3052_v44  ;;  %1634 = vmatprep.subr.bf16.mxu0 %v3055_v45 }
  0xb3   :  { %2729 = vmatprep.subr.bf16.mxu1 %v3220_v49 }
  0xb5   :  { %1894 = vmatmul.mubr.bf16.vlgmr.msra.gmra.mrb[16].mxu1 %v3305_v46  ;;  %1635 = vmatpush1.bf16.msra.mxu0 %v3053_v47 }
  0xb6   :  { %2730 = vmatpush3.bf16.msra.mxu1 %v3058_v48  ;;  %1636 = vmatprep.subr.bf16.mxu0 %v3061_v50 }
  0xb7   :  { %2731 = vmatprep.subr.bf16.mxu1 %v3220_v49  ;;  %2745 = vmatprep.mubr.msk.bf16.mxu1 %vm3221_vm0, %v3220_v49 }
  0xb9   :  { %1637 = vmatpush1.bf16.msra.mxu0 %v3059_v51  ;;  %v3135_v51 = vld [vmem:[%s3474_s3 + $0x40] sm:$0xff]  }
  0xba   :  { %2732 = vmatpush3.bf16.msra.mxu1 %v3062_v52  ;;  %1638 = vmatprep.subr.bf16.mxu0 %v3065_v53  ;;  %v3136_v52 = vld [vmem:[%s3474_s3] sm:$0xff]   ;;  %v3137_v53 = vld [vmem:[%s3474_s3 + $0x48] sm:$0xff]  }
  0xbb   :  { %2733 = vmatprep.subr.bf16.mxu1 %v3220_v49 }
  0xbd   :  { %1639 = vmatpush1.bf16.msra.mxu0 %v3063_v54  ;;  %v337_v54 = vlaneseq }
  0xbe   :  { %2734 = vmatpush3.bf16.msra.mxu1 %v3066_v55  ;;  %1640 = vmatprep.subr.bf16.mxu0 %v3069_v56  ;;  %v3139_v55 = vld [vmem:[%s3474_s3 + $0x50] sm:$0xff]  }
  0xbf   :  { %2735 = vmatprep.subr.bf16.mxu1 %v3220_v49  ;;  %v338_v56 = vshrl.u32 %v337_v54, 7  ;;  %v3156_v54 = vld [vmem:[%s3474_s3 + $0xa8] sm:$0xff]  }
  0xc1   :  { %1641 = vmatpush1.bf16.msra.mxu0 %v3067_v57  ;;  %v3140_v57 = vld [vmem:[%s3474_s3 + $0x10] sm:$0xff]  }
  0xc2   :  { %2736 = vmatpush3.bf16.msra.mxu1 %v3070_v58  ;;  %1642 = vmatprep.subr.bf16.mxu0 %v3073_v59  ;;  %v3141_v58 = vld [vmem:[%s3474_s3 + $0x58] sm:$0xff]   ;;  %v347_v59 = vsub.s32 2, %v338_v56 }
  0xc3   :  { %2737 = vmatprep.subr.bf16.mxu1 %v3220_v49 }
  0xc5   :  { %1643 = vmatpush1.bf16.msra.mxu0 %v3071_v60  ;;  %v335_v60 = vld [vmem:[%s3473_s2] sm:$0x7] }
  0xc6   :  { %2738 = vmatpush3.bf16.msra.mxu1 %v3074_v61  ;;  %1644 = vmatprep.subr.bf16.mxu0 %v3077_v62  ;;  %v348_v61 = vrot.slane %v335_v60, %v347_v59  ;;  %v2228_v59 = vld [vmem:[%s3476_s5 + $0x8] sm:$0xff] }
  0xc7   :  { %2739 = vmatprep.subr.bf16.mxu1 %v3220_v49 }
  0xc9   :  { %1645 = vmatpush1.bf16.msra.mxu0 %v3075_v63 }
  0xca   :  { %2740 = vmatpush3.bf16.msra.mxu1 %v3078_v0  ;;  %1646 = vmatprep.subr.bf16.mxu0 %v3081_v1 }
  0xcb   :  { %2741 = vmatprep.subr.bf16.mxu1 %v3220_v49 }
  0xcd   :  { %1647 = vmatpush1.bf16.msra.mxu0 %v3079_v2 }
  0xce   :  { %2742 = vmatpush3.bf16.msra.mxu1 %v3082_v3  ;;  %1648 = vmatprep.subr.bf16.mxu0 %v3085_v4 }
  0xcf   :  { %2743 = vmatprep.subr.bf16.mxu1 %v3220_v49 }
  0xd1   :  { %1649 = vmatpush1.bf16.msra.mxu0 %v3083_v5  ;;  %v3142_v5 = vld [vmem:[%s3474_s3 + $0x18] sm:$0xff]  }
  0xd2   :  { %2744 = vmatpush3.bf16.msra.mxu1 %v3086_v6  ;;  %1659 = vmatprep.subr.bf16.mxu0 %v3089_v7 }
  0xd3   :  { %2685 = vmatprep.subr.bf16.mxu1 %v3135_v51 }
  0xd4   :  { %1651 = vmatmul.mubr.bf16.vlgmr.msra.gmra.mrb[0].mxu0 %v3294_v13  ;;  %v3102_v13 = vld [vmem:[#allocation2 + $0x4f8] ss:$12 sps:$4 sm:$0xff]  }
  0xd5   :  { %2746 = vmatmul.mubr.bf16.vlgmr.msra.gmra.mrb[20].mxu1 %v3167_v10  ;;  %1660 = vmatpush1.bf16.msra.mxu0 %v3087_v8  ;;  %v3143_v8 = vld [vmem:[%s3474_s3 + $0x60] sm:$0xff]  }
  0xd6   :  { %1691 = vmatprep.mubr.bf16.mxu0 %v3301_v20  ;;  %1661 = vmatprep.subr.bf16.mxu0 %v3092_v9  ;;  %v3105_v20 = vld [vmem:[#allocation2 + $0x510] ss:$12 sps:$4 sm:$0xff]  }
  0xd7   :  { %2686 = vmatpush3.bf16.msra.mxu1 %v3136_v52  ;;  %v3154_v52 = vld [vmem:[%s3474_s3 + $0x98] sm:$0xff]  }
  0xd8   :  { %2687 = vmatprep.subr.bf16.mxu1 %v3137_v53  ;;  %v3155_v53 = vld [vmem:[%s3474_s3 + $0xa0] sm:$0xff]  }
  0xd9   :  { %1662 = vmatpush1.bf16.msra.mxu0 %v3090_v11  ;;  %v3144_v11 = vld [vmem:[%s3474_s3 + $0x20] sm:$0xff]  }
  0xda   :  { %1663 = vmatprep.subr.bf16.mxu0 %v3095_v12 }
  0xdd   :  { %1664 = vmatpush1.bf16.msra.mxu0 %v3093_v14 }
  0xde   :  { %1665 = vmatprep.subr.bf16.mxu0 %v3098_v15  ;;  %v3145_v15 = vld [vmem:[%s3474_s3 + $0x68] sm:$0xff]  }
  0xe1   :  { %1666 = vmatpush1.bf16.msra.mxu0 %v3096_v16  ;;  %v3146_v16 = vld [vmem:[%s3474_s3 + $0x28] sm:$0xff]  }
  0xe2   :  { %1667 = vmatprep.subr.bf16.mxu0 %v3101_v17  ;;  %v3147_v17 = vld [vmem:[%s3474_s3 + $0x70] sm:$0xff]  }
  0xe5   :  { %1668 = vmatpush1.bf16.msra.mxu0 %v3099_v18  ;;  %v3148_v18 = vld [vmem:[%s3474_s3 + $0x30] sm:$0xff]  }
  0xe6   :  { %1669 = vmatprep.subr.bf16.mxu0 %v3104_v19  ;;  %v3149_v19 = vld [vmem:[%s3474_s3 + $0x78] sm:$0xff]  }
  0xe9   :  { %1670 = vmatpush1.bf16.msra.mxu0 %v3102_v13  ;;  %v3150_v13 = vld [vmem:[%s3474_s3 + $0x38] sm:$0xff]  }
  0xea   :  { %1671 = vmatprep.subr.bf16.mxu0 %v3107_v21 }
  0xed   :  { %1672 = vmatpush1.bf16.msra.mxu0 %v3105_v20 }
  0xee   :  { %1673 = vmatprep.subr.bf16.mxu0 %v3110_v22 }
  0xf1   :  { %1674 = vmatpush1.bf16.msra.mxu0 %v3108_v23 }
  0xf2   :  { %1675 = vmatprep.subr.bf16.mxu0 %v3113_v24 }
  0xf5   :  { %1676 = vmatpush1.bf16.msra.mxu0 %v3111_v25 }
  0xf6   :  { %1677 = vmatprep.subr.bf16.mxu0 %v3116_v26 }
  0xf9   :  { %1678 = vmatpush1.bf16.msra.mxu0 %v3114_v27 }
  0xfa   :  { %1679 = vmatprep.subr.bf16.mxu0 %v3119_v28 }
  0xfd   :  { %1680 = vmatpush1.bf16.msra.mxu0 %v3117_v29 }
  0xfe   :  { %1681 = vmatprep.subr.bf16.mxu0 %v3122_v30 }
 0x101   :  { %1682 = vmatpush1.bf16.msra.mxu0 %v3120_v31  ;;  %v339_v31 = vsub.s32 0, %v338_v56 }
 0x102   :  { %1683 = vmatprep.subr.bf16.mxu0 %v3125_v32  ;;  %v343_v32 = vsub.s32 1, %v338_v56 }
 0x105   :  { %1684 = vmatpush1.bf16.msra.mxu0 %v3123_v33  ;;  %v340_v33 = vrot.slane %v335_v60, %v339_v31 }
 0x106   :  { %1685 = vmatprep.subr.bf16.mxu0 %v3128_v34  ;;  %v344_v34 = vrot.slane %v335_v60, %v343_v32  ;;  %v2229_v60 = vld [vmem:[%s3476_s5 + $0x10] sm:$0xff] }
 0x108   :  { %v3323_v37 = vpop.f32.mrb[0].mxu1 }
 0x109   :  { %v3325_v38 = vpop.f32.mrb[1].mxu1  ;;  %1686 = vmatpush1.bf16.msra.mxu0 %v3126_v35 }
 0x10a   :  { %v1738_v40 = vpop.f32.mrb[2].mxu1  ;;  %1687 = vmatprep.subr.bf16.mxu0 %v3131_v36 }
 0x10b   :  { %v1739_v42 = vpop.f32.mrb[3].mxu1 }
 0x10d   :  { %1688 = vmatpush1.bf16.msra.mxu0 %v3129_v39 }
 0x10e   :  { %1689 = vmatprep.subr.bf16.mxu0 %v3134_v41 }
 0x111   :  { %1690 = vmatpush1.bf16.msra.mxu0 %v3132_v43 }
 0x114   :  { %1692 = vmatmul.mubr.bf16.vlgmr.msra.gmra.mrb[0].mxu0 %v3305_v46  ;;  %v3138_v46 = vld [vmem:[%s3474_s3 + $0x8] sm:$0xff]  }
 0x115   :  { %2688 = vmatpush3.bf16.msra.mxu1 %v3138_v46  ;;  %v3157_v46 = vld [vmem:[%s3474_s3 + $0xb0] sm:$0xff]  }
 0x116   :  { %2689 = vmatprep.subr.bf16.mxu1 %v3139_v55  ;;  %v3158_v55 = vld [vmem:[%s3474_s3 + $0xb8] sm:$0xff]  }
 0x119   :  { %2690 = vmatpush3.bf16.msra.mxu1 %v3140_v57 }
 0x11a   :  { %2691 = vmatprep.subr.bf16.mxu1 %v3141_v58  ;;  %v2227_v58 = vld [vmem:[%s3476_s5] sm:$0xff] }
 0x11d   :  { %2692 = vmatpush3.bf16.msra.mxu1 %v3142_v5 }
 0x11e   :  { %2693 = vmatprep.subr.bf16.mxu1 %v3143_v8 }
 0x121   :  { %2694 = vmatpush3.bf16.msra.mxu1 %v3144_v11 }
 0x122   :  { %2695 = vmatprep.subr.bf16.mxu1 %v3145_v15 }
 0x125   :  { %2696 = vmatpush3.bf16.msra.mxu1 %v3146_v16 }
 0x126   :  { %2697 = vmatprep.subr.bf16.mxu1 %v3147_v17 }
 0x128   :  { %v2604_v44 = vpop.f32.mrb[4].mxu1 }
 0x129   :  { %v2605_v45 = vpop.f32.mrb[5].mxu1  ;;  %2698 = vmatpush3.bf16.msra.mxu1 %v3148_v18  ;;  %v2561_v18 = vld [vmem:[%s3475_s4] ss:$0 sm:$0xff]  ;;  %s3190_s4 = scalar_lea.vmem %s2328_s25, 128 }
 0x12a   :  { %v2606_v47 = vadd.f32 %v2605_v45, %v2604_v44  ;;  %v2607_v48 = vpop.f32.mrb[6].mxu1  ;;  %2699 = vmatprep.subr.bf16.mxu1 %v3149_v19  ;;  %p3191_p8 = scmp.ne.s32.totalorder %s2328_s25, %s3190_s4  ;;  %p3196_p10 = scmp.lt.s32.totalorder %s3190_s4, %s3190_s4 }
 0x12b   :  { %v2608_v50 = vpop.f32.mrb[7].mxu1 }
 0x12c   :  { %v1776_v62 = vadd.f32 %v2606_v47, %v348_v61  ;;  %v3151_v50 = vld [vmem:[%s3474_s3 + $0x80] sm:$0xff]   ;;  %v3222_v61 = vmov 0.0|0.0   ;;  %p3197_p11 = por %p3196_p10, %p3195_p9 }
 0x12d   :  { %2700 = vmatpush3.bf16.msra.mxu1 %v3150_v13 }
 0x12e   :  { %2749 = vmatprep.subr.bf16.mxu1 %v3220_v49  ;;  %p3198_p12 = pnand %p3197_p11, %p3191_p8 }
 0x148   :  { %v2626_v63 = vpop.f32.mrb[8].mxu1 }
 0x149   :  { %v2627_v0 = vpop.f32.mrb[9].mxu1 }
 0x14a   :  { %v2628_v1 = vadd.f32 %v2627_v0, %v2626_v63  ;;  %v2629_v2 = vpop.f32.mrb[10].mxu1  ;;  %v2230_v63 = vld [vmem:[%s3476_s5 + $0x18] sm:$0xff]  ;;  %v2231_v0 = vld [vmem:[%s3476_s5 + $0x20] sm:$0xff] }
 0x14b   :  { %v2630_v3 = vpop.f32.mrb[11].mxu1 }
 0x14c   :  { %v1816_v4 = vadd.f32 %v2628_v1, %v1776_v62  ;;  %v2797_v62 = vpack.c.bf16 %v2228_v59, %v2227_v58  ;;  %v2232_v1 = vld [vmem:[%s3476_s5 + $0x28] sm:$0xff]  ;;  %v2233_v3 = vld [vmem:[%s3476_s5 + $0x30] sm:$0xff] }
 0x14d   :  { %v2803_v2 = vpack.c.bf16 %v2232_v1, %v2231_v0 }
 0x168   :  { %v2648_v6 = vpop.f32.mrb[12].mxu1 }
 0x169   :  { %v2649_v7 = vpop.f32.mrb[13].mxu1 }
 0x16a   :  { %v2650_v9 = vadd.f32 %v2649_v7, %v2648_v6  ;;  %v2651_v10 = vpop.f32.mrb[14].mxu1  ;;  %v2235_v6 = vld [vmem:[%s3476_s5 + $0x40] sm:$0xff]  ;;  %v2236_v7 = vld [vmem:[%s3476_s5 + $0x48] sm:$0xff] }
 0x16b   :  { %v2652_v12 = vpop.f32.mrb[15].mxu1  ;;  %v2809_v8 = vpack.c.bf16 %v2236_v7, %v2235_v6  ;;  %v2238_v10 = vld [vmem:[%s3476_s5 + $0x58] sm:$0xff] }
 0x16c   :  { %v1856_v14 = vadd.f32 %v2650_v9, %v1816_v4  ;;  %v2234_v4 = vld [vmem:[%s3476_s5 + $0x38] sm:$0xff]  ;;  %v2237_v9 = vld [vmem:[%s3476_s5 + $0x50] sm:$0xff] }
 0x16d   :  { %v2806_v5 = vpack.c.bf16 %v2234_v4, %v2233_v3  ;;  %v2812_v11 = vpack.c.bf16 %v2238_v10, %v2237_v9 }
 0x188   :  { %v2670_v21 = vpop.f32.mrb[16].mxu1 }
 0x189   :  { %v2671_v20 = vpop.f32.mrb[17].mxu1 }
 0x18a   :  { %v2672_v22 = vadd.f32 %v2671_v20, %v2670_v21  ;;  %v2673_v23 = vpop.f32.mrb[18].mxu1 }
 0x18b   :  { %v2674_v24 = vpop.f32.mrb[19].mxu1 }
 0x18c   :  { %v1896_v25 = vadd.f32 %v2672_v22, %v1856_v14 }
 0x1a8   :  { %v1935_v26 = vpop.f32.mrb[20].mxu1 }
 0x1a9   :  { %v1936_v27 = vadd.f32 %v1935_v26, %v1896_v25  ;;  %v2747_v28 = vpop.f32.mrb[21].mxu1  ;;  %v2586_v25 = vld [vmem:[%s3477_s6] ss:$0 sm:$0xff] }
 0x1aa   :  { %v1938_v29 = vpop.f32.mrb[22].mxu1 }
 0x1ab   :  { %v2748_v30 = vpop.f32.mrb[23].mxu1 }
 0x1e7   :  { %v1693_v35 = vpop.f32.mrb[0].mxu0 }
 0x1e8   :  { %v2814_v36 = vadd.f32 %v1693_v35, %v340_v33  ;;  %v1695_v39 = vpop.f32.mrb[1].mxu0 }
 0x1e9   :  { %v2816_v40 = vadd.f32 %v1695_v39, %v344_v34  ;;  %v1697_v41 = vpop.f32.mrb[2].mxu0 }
 0x1ea   :  { %v2815_v42 = vadd.f32 %v2814_v36, %v3323_v37  ;;  %v1698_v43 = vpop.f32.mrb[3].mxu0  ;;  %v3152_v37 = vld [vmem:[%s3474_s3 + $0x88] sm:$0xff]  }
 0x1eb   :  { %v2817_v44 = vadd.f32 %v2816_v40, %v3325_v38  ;;  %v3153_v38 = vld [vmem:[%s3474_s3 + $0x90] sm:$0xff]  }
 0x1ec   :  { %3159 = vtanh.f32 %v2815_v42 }
 0x1ed   :  { %3161 = vtanh.f32 %v2817_v44 }
 0x1ee   :  { %3163 = vtanh.f32 %v1936_v27 }
 0x1f6   :  { %v3160_v45 = vpop.eup %3159 }
 0x1f7   :  { %v3162_v47 = vpop.eup %3161  ;;  %v1944_v51 = vpack.c.bf16 %v3160_v45, %v3160_v45 }
 0x1f8   :  { %v1945_v48 = vpack.c.bf16 %v3162_v47, %v3162_v47  ;;  %v3164_v56 = vpop.eup %3163 }
 0x1f9   :  { %v1946_v57 = vpack.c.bf16 %v3164_v56, %v3164_v56 }
 0x1fa   :  { %2178 = vmatprep.mubr.bf16.mxu1 %v1945_v48 }
 0x1fb   :  { %2179 = vmatmul.mubr.bf16.vlgmr.msra.gmra.mrb[24].mxu1 %v1944_v51 }
 0x1fc   :  { %2750 = vmatpush3.bf16.msra.mxu1 %v3151_v50  ;;  %2765 = vmatprep.mubr.msk.bf16.mxu1 %vm3221_vm0, %v3220_v49 }
 0x1fd   :  { %2751 = vmatprep.subr.bf16.mxu1 %v3220_v49 }
 0x200   :  { %2752 = vmatpush3.bf16.msra.mxu1 %v3152_v37 }
 0x201   :  { %2753 = vmatprep.subr.bf16.mxu1 %v3220_v49 }
 0x204   :  { %2754 = vmatpush3.bf16.msra.mxu1 %v3153_v38 }
 0x205   :  { %2755 = vmatprep.subr.bf16.mxu1 %v3220_v49 }
 0x208   :  { %2756 = vmatpush3.bf16.msra.mxu1 %v3154_v52 }
 0x209   :  { %2757 = vmatprep.subr.bf16.mxu1 %v3220_v49 }
 0x20c   :  { %2758 = vmatpush3.bf16.msra.mxu1 %v3155_v53 }
 0x20d   :  { %2759 = vmatprep.subr.bf16.mxu1 %v3220_v49 }
 0x210   :  { %2760 = vmatpush3.bf16.msra.mxu1 %v3156_v54 }
 0x211   :  { %2761 = vmatprep.subr.bf16.mxu1 %v3220_v49 }
 0x214   :  { %2762 = vmatpush3.bf16.msra.mxu1 %v3157_v46 }
 0x215   :  { %2763 = vmatprep.subr.bf16.mxu1 %v3220_v49 }
 0x218   :  { %2764 = vmatpush3.bf16.msra.mxu1 %v3158_v55 }
 0x219   :  { %2796 = vmatprep.subr.bf16.mxu1 %v3222_v61 }
 0x21b   :  { %2766 = vmatmul.mubr.bf16.vlgmr.msra.gmra.mrb[28].mxu1 %v1946_v57 }
 0x21c   :  { %2793 = vmatprep.mubr.msk.f32.mxu1 %vm3221_vm0, %v3220_v49  ;;  %2798 = vmatpush3.bf16.msra.mxu1 %v2797_v62  ;;  %v2800_v49 = vpack.c.bf16 %v2230_v63, %v2229_v60 }
 0x21d   :  { %2799 = vmatprep.subr.bf16.mxu1 %v3222_v61 }
 0x220   :  { %2801 = vmatpush3.bf16.msra.mxu1 %v2800_v49 }
 0x221   :  { %2802 = vmatprep.subr.bf16.mxu1 %v3222_v61 }
 0x224   :  { %2804 = vmatpush3.bf16.msra.mxu1 %v2803_v2 }
 0x225   :  { %2805 = vmatprep.subr.bf16.mxu1 %v3222_v61 }
 0x228   :  { %2807 = vmatpush3.bf16.msra.mxu1 %v2806_v5 }
 0x229   :  { %2808 = vmatprep.subr.bf16.mxu1 %v3222_v61 }
 0x22c   :  { %2810 = vmatpush3.bf16.msra.mxu1 %v2809_v8 }
 0x22d   :  { %2811 = vmatprep.subr.bf16.mxu1 %v3222_v61 }
 0x230   :  { %2813 = vmatpush3.bf16.msra.mxu1 %v2812_v11 }
 0x2ce   :  { %v2701_v12 = vpop.f32.mrb[24].mxu1 }
 0x2cf   :  { %v2702_v14 = vpop.f32.mrb[25].mxu1 }
 0x2d0   :  { %v2703_v15 = vadd.f32 %v2702_v14, %v2701_v12  ;;  %v2704_v16 = vpop.f32.mrb[26].mxu1 }
 0x2d1   :  { %v2705_v17 = vpop.f32.mrb[27].mxu1 }
 0x2d2   :  { %v2181_v19 = vadd.f32 %v2703_v15, %v2561_v18 }
 0x2ee   :  { %v2220_v13 = vpop.f32.mrb[28].mxu1 }
 0x2ef   :  { %v2221_v21 = vadd.f32 %v2220_v13, %v2181_v19  ;;  %v2767_v20 = vpop.f32.mrb[29].mxu1 }
 0x2f0   :  { %v2223_v22 = vpop.f32.mrb[30].mxu1 }
 0x2f1   :  { %3165 = vtanh.f32 %v2221_v21  ;;  %v2768_v23 = vpop.f32.mrb[31].mxu1 }
 0x2fb   :  { %v3166_v24 = vpop.eup %3165 }
 0x2fc   :  { %2794 = vmatmul.mubr.msk.f32.vlgmr.msra.gmra.mrb[32].mxu1 %vm2246_vm1, %v3166_v24 }
 0x3cf   :  { %v2316_v26 = vpop.f32.mrb[32].mxu1 }
 0x3d0   :  { %v2317_v27 = vadd.f32 %v2586_v25, %v2316_v26  ;;  %v2795_v28 = vpop.f32.mrb[33].mxu1 }
 0x3d2   :  { %2320 = vst [vmem:[#allocation5] sm:$0xff] %v2317_v27 }
 0x3d3   :  { %3201 = shalt.err (!%p3198_p12)
}
 0x3d4   :  { %s3202_s27 = scalar_lea.hbm %s3478_s7, 128 }
 0x3d5   :  { %p3203_p13 = scmp.ne.s32.totalorder %s3478_s7, %s3202_s27  ;;  %p3206_p0 = scmp.lt.u32.totalorder %s3202_s27, %s3478_s7 }
 0x3d7   :  { %p3208_p1 = pnand %p3206_p0, %p3203_p13 }
 0x3d9   :  { %3211 = shalt.err (!%p3208_p1)
}
 0x3da   :  { %2330 = dma.vmem_to_hbm [thread:$0]  %s2328_s25, 128, %s3478_s7, [#allocation4]  }
 0x3db   :  { %3214 = dma.done.wait [#allocation4], 128  }
 0x3dc   :  { %3215 = vsyncadd [#allocation4], 4294967168 }
 0x3dd   :  { %2334 = vsyncpa [#allocation3], 1 }
 0x3de   :  { %2335 = vsyncpa [#allocation4], 1 }

</bundles_post_ra>
